<compile_context>
chip_gen: v5e
topology: v5e:2x2
jax: 0.10.0
libtpu: 0.0.40
codegen_flags: <defaults>
</compile_context>

<pallas_src>
import functools

import jax
import jax.numpy as jnp
from jax import lax
from jax.experimental import pallas as pl
from jax.experimental.pallas import tpu as pltpu

EPS = 1e-6
_LANE = 128
_SUB = 8


def _cdiv(a, b):
    return -(-a // b)


def _round_up(v, m):
    return _cdiv(v, m) * m


def _vmem_capacity_bytes():
    try:
        return int(pltpu.get_tpu_info().vmem_capacity_bytes)
    except Exception:
        return 64 * 1024 * 1024          # conservative fallback (v7x per-TC VMEM)


def _dice_partial_kernel(x_ref, t_ref, out_ref, acc_ref, *,
                         sigmoid_normalization, tile_rows, tiles_per_split,
                         s_total, needs_mask):
    h = pl.program_id(1)                 # spatial split (v7x TC parallelism)
    j = pl.program_id(2)                 # row-tile index within the split

    @pl.when(j == 0)
    def _():
        acc_ref[...] = jnp.zeros_like(acc_ref)

    x = x_ref[0].astype(jnp.float32)     # (C, TR, 128)
    # SkipLastTargetChannelWrapper: the extra (C+1)-th target channel is never
    # DMA'd -- the target BlockSpec only covers the first C channels.
    t = t_ref[0].astype(jnp.float32)     # (C, TR, 128)

    if sigmoid_normalization:
        p = jax.nn.sigmoid(x)
    else:
        # Softmax over the channel axis: with the (C, TR, 128) layout this is
        # a cheap cross-vreg VPU max/add; the reciprocal runs on the EUP slot.
        m = jnp.max(x, axis=0, keepdims=True)
        e = jnp.exp(x - m)
        p = e * pl.reciprocal(jnp.sum(e, axis=0, keepdims=True), approx=True)

    def _accumulate(pv, tv):
        # Per-step partial sums over the row (sublane) axis into a lane-dense
        # (3, C, 128) accumulator; the 128-lane reduce happens only in the
        # JAX epilogue, never in the hot loop.
        acc_ref[0] += jnp.sum(pv * tv, axis=1)
        acc_ref[1] += jnp.sum(pv * pv, axis=1)
        acc_ref[2] += jnp.sum(tv * tv, axis=1)

    if needs_mask:
        # Only the globally-last tile can be ragged (row pad up to the tile
        # size plus the 128-lane pad of the final row); interior tiles skip
        # the iota/compare/select entirely.
        is_last = jnp.logical_and(h == pl.num_programs(1) - 1,
                                  j == pl.num_programs(2) - 1)

        @pl.when(is_last)
        def _():
            row = lax.broadcasted_iota(jnp.int32, p.shape, 1)
            lane = lax.broadcasted_iota(jnp.int32, p.shape, 2)
            base = (h * tiles_per_split + j) * tile_rows
            valid = (base + row) * _LANE + lane < s_total
            _accumulate(jnp.where(valid, p, 0.0), jnp.where(valid, t, 0.0))

        @pl.when(jnp.logical_not(is_last))
        def _():
            _accumulate(p, t)
    else:
        _accumulate(p, t)

    @pl.when(j == pl.num_programs(2) - 1)
    def _():
        out_ref[0, 0] = acc_ref[...]


def skip_last_target_channel_dice_loss(x, target, weight=None,
                                       sigmoid_normalization=True,
                                       squeeze_channel=False):
    """Forward of SkipLastTargetChannelWrapper(DiceLoss).

    x:      (N, C, *spatial)
    target: (N, C+1, *spatial)   -- last channel stripped by the wrapper
    weight: optional (C,) per-channel weight.
    Returns a scalar float32 loss.
    """
    assert target.shape[1] > 1, (
        "Target tensor has a singleton channel dimension, cannot remove channel")
    assert x.shape[0] == target.shape[0] and x.shape[2:] == target.shape[2:]
    N, C = x.shape[0], x.shape[1]
    Ct = target.shape[1]
    assert Ct - 1 == C, "after dropping the last target channel shapes must match"
    # TODO(synk): squeeze_channel=True only matters for class-index losses
    # (e.g. CrossEntropy); for the Dice-style wrapped loss implemented here it
    # is a no-op in the flattened (C, N*spatial) formulation.
    del squeeze_channel

    S = 1
    for d in x.shape[2:]:
        S *= d

    xf = x.reshape(N, C, S)              # free reshape, native dtype (no upcast)
    tf = target.reshape(N, Ct, S)

    # Lane-dense 4D layout (N, C, R, 128). The reshape is free when S is a
    # multiple of 128 (common for U-Net volumes); otherwise a small pad to the
    # next multiple of 128 is paid once and the tail is masked in-kernel.
    R = _cdiv(S, _LANE)
    S_pad = R * _LANE
    if S_pad != S:
        xf = jnp.pad(xf, ((0, 0), (0, 0), (0, S_pad - S)))
        tf = jnp.pad(tf, ((0, 0), (0, 0), (0, S_pad - S)))
    xf = xf.reshape(N, C, R, _LANE)
    tf = tf.reshape(N, Ct, R, _LANE)

    # ---- Generation-aware tile sizing --------------------------------------
    # Budget double-buffered input blocks plus f32 in-kernel temporaries
    # against ~half of this generation's VMEM so each grid step moves many MiB.
    vmem_cap = _vmem_capacity_bytes()
    row_in_bytes = _LANE * C * (xf.dtype.itemsize + tf.dtype.itemsize)
    row_tmp_bytes = _LANE * C * 4 * 4    # f32 temporaries (p, casts, fusion slack)
    budget = min(vmem_cap // 2, 40 * 1024 * 1024)
    tile_rows = max(_SUB,
                    (budget // (2 * row_in_bytes + row_tmp_bytes)) // _SUB * _SUB)
    if tile_rows >= R:
        tile_rows = R                    # single full-extent row tile (always legal)
    if N < 2 and R >= 2 * _SUB:
        # Guarantee >= 2 row tiles so the spatial "parallel" axis can keep
        # both v7x TensorCores busy when the batch axis cannot.
        tile_rows = min(tile_rows, _round_up(_cdiv(R, 2), _SUB))

    num_tiles = _cdiv(R, tile_rows)
    split = 2 if (num_tiles >= 2 and num_tiles % 2 == 0) else 1
    tiles_per_split = num_tiles // split
    needs_mask = (num_tiles * tile_rows * _LANE != S)

    vmem_limit = min(int(vmem_cap * 0.9), budget + 16 * 1024 * 1024)

    kernel = functools.partial(
        _dice_partial_kernel,
        sigmoid_normalization=sigmoid_normalization,
        tile_rows=tile_rows, tiles_per_split=tiles_per_split,
        s_total=S, needs_mask=needs_mask)

    parts = pl.pallas_call(
        kernel,
        out_shape=jax.ShapeDtypeStruct((N, split, 3, C, _LANE), jnp.float32),
        grid_spec=pltpu.PrefetchScalarGridSpec(
            num_scalar_prefetch=0,
            grid=(N, split, tiles_per_split),
            in_specs=[
                # input: (1, C, TR, 128) tile
                pl.BlockSpec((1, C, tile_rows, _LANE),
                             lambda n, h, j: (n, 0, h * tiles_per_split + j, 0)),
                # target: only the first C of the C+1 channels are ever DMA'd
                pl.BlockSpec((1, C, tile_rows, _LANE),
                             lambda n, h, j: (n, 0, h * tiles_per_split + j, 0)),
            ],
            out_specs=pl.BlockSpec((1, 1, 3, C, _LANE),
                                   lambda n, h, j: (n, h, 0, 0, 0)),
            scratch_shapes=[pltpu.VMEM((3, C, _LANE), jnp.float32)],
        ),
        compiler_params=pltpu.CompilerParams(
            dimension_semantics=("parallel", "parallel", "arbitrary"),
            vmem_limit_bytes=vmem_limit),
    )(xf, tf)

    # Tiny plain-JAX epilogue: cross-lane/batch/split reduce, weight, clamp,
    # dice, mean.
    sums = jnp.sum(parts, axis=(0, 1, 4))          # (3, C)
    intersect, din, dt = sums[0], sums[1], sums[2]
    if weight is not None:
        intersect = jnp.asarray(weight, jnp.float32) * intersect
    denom = jnp.maximum(din + dt, EPS)
    return 1.0 - jnp.mean(2.0 * intersect / denom)


def _reference(x, target, weight=None, sigmoid_normalization=True):
    # Pure-JAX reference mirroring the PyTorch wrapper + DiceLoss semantics.
    t = target[:, :-1, ...].astype(jnp.float32)
    C = x.shape[1]
    if sigmoid_normalization:
        p = jax.nn.sigmoid(x.astype(jnp.float32))
    else:
        p = jax.nn.softmax(x.astype(jnp.float32), axis=1)
    perm = (1, 0) + tuple(range(2, x.ndim))
    pf = jnp.transpose(p, perm).reshape(C, -1)
    tf = jnp.transpose(t, perm).reshape(C, -1)
    intersect = jnp.sum(pf * tf, axis=-1)
    if weight is not None:
        intersect = jnp.asarray(weight, jnp.float32) * intersect
    denom = jnp.maximum(jnp.sum(pf * pf, -1) + jnp.sum(tf * tf, -1), EPS)
    return 1.0 - jnp.mean(2.0 * intersect / denom)


if __name__ == "__main__":
    key = jax.random.PRNGKey(0)
    k1, k2, k3, k4 = jax.random.split(key, 4)

    # Case 1: 4D (N, C, H, W), 128-aligned spatial size, N=2.
    N, C, H, W = 2, 4, 16, 16
    x = jax.random.normal(k1, (N, C, H, W), dtype=jnp.float32)
    target = (jax.random.uniform(k2, (N, C + 1, H, W)) > 0.5).astype(jnp.float32)
    w = jnp.array([1.0, 0.5, 2.0, 1.5], dtype=jnp.float32)

    # Case 2: 5D volume (N, C, D, H, W) with N=1 (exercises the spatial split
    # used for v7x) and a spatial size that is NOT a multiple of 128
    # (exercises the ragged-tail masking path).
    x2 = jax.random.normal(k3, (1, 4, 5, 24, 24), dtype=jnp.float32)
    t2 = (jax.random.uniform(k4, (1, 5, 5, 24, 24)) > 0.5).astype(jnp.float32)

    cases = [
        (x, target, None, True),
        (x, target, w, True),
        (x, target, None, False),
        (x2, t2, None, True),
        (x2, t2, None, False),
    ]
    for xi, ti, wi, sig in cases:
        loss = skip_last_target_channel_dice_loss(
            xi, ti, weight=wi, sigmoid_normalization=sig)
        loss = jax.block_until_ready(loss)
        ref = _reference(xi, ti, weight=wi, sigmoid_normalization=sig)
        assert jnp.allclose(loss, ref, rtol=2e-3, atol=2e-4), (
            xi.shape, wi is not None, sig, float(loss), float(ref))

    print("KERNEL_OK")
</pallas_src>

<mosaic_0001>
module attributes {stable_mosaic.version = 11 : i64} {
  func.func @_dice_partial_kernel(%arg0: i32, %arg1: i32, %arg2: i32, %arg3: memref<1x4x2x128xf32, #tpu.memory_space<vmem>>, %arg4: memref<1x4x2x128xf32, #tpu.memory_space<vmem>>, %arg5: memref<1x1x3x4x128xf32, #tpu.memory_space<vmem>>, %arg6: memref<3x4x128xf32, #tpu.memory_space<vmem>>) attributes {dimension_semantics = [#tpu.dimension_semantics<parallel>, #tpu.dimension_semantics<parallel>, #tpu.dimension_semantics<arbitrary>], iteration_bounds = array<i64: 2, 1, 1>, scalar_prefetch = 0 : i64, scratch_operands = 1 : i64, tpu.core_type = #tpu.core_type<tc>, window_params = [{transform_indices = @transform_0, window_bounds = array<i64: 1, 4, 2, 128>}, {transform_indices = @transform_1, window_bounds = array<i64: 1, 4, 2, 128>}, {transform_indices = @transform_2, window_bounds = array<i64: 1, 1, 3, 4, 128>}]} {
    %c0_i32 = arith.constant 0 : i32
    %0 = arith.cmpi eq, %arg2, %c0_i32 : i32
    %1 = arith.extui %0 : i1 to i32
    %c0_i32_0 = arith.constant 0 : i32
    %2 = arith.cmpi ne, %1, %c0_i32_0 : i32
    scf.if %2 {
      %cst_29 = arith.constant 0.000000e+00 : f32
      %39 = vector.broadcast %cst_29 : f32 to vector<3x4x128xf32>
      %c0_30 = arith.constant 0 : index
      %c0_31 = arith.constant 0 : index
      %c0_32 = arith.constant 0 : index
      %40 = vector.load %arg6[%c0_30, %c0_31, %c0_32] : memref<3x4x128xf32, #tpu.memory_space<vmem>>, vector<3x4x128xf32>
      tpu.vector_store %arg6[%c0_30, %c0_31, %c0_32], %39 {strides = array<i32>} : memref<3x4x128xf32, #tpu.memory_space<vmem>>, vector<3x4x128xf32>,
    } else {
    }
    %c0 = arith.constant 0 : index
    %c0_1 = arith.constant 0 : index
    %c0_2 = arith.constant 0 : index
    %c0_3 = arith.constant 0 : index
    %3 = vector.load %arg3[%c0, %c0_1, %c0_2, %c0_3] : memref<1x4x2x128xf32, #tpu.memory_space<vmem>>, vector<1x4x2x128xf32>
    %4 = vector.shape_cast %3 : vector<1x4x2x128xf32> to vector<4x2x128xf32>
    %c0_4 = arith.constant 0 : index
    %c0_5 = arith.constant 0 : index
    %c0_6 = arith.constant 0 : index
    %c0_7 = arith.constant 0 : index
    %5 = vector.load %arg4[%c0_4, %c0_5, %c0_6, %c0_7] : memref<1x4x2x128xf32, #tpu.memory_space<vmem>>, vector<1x4x2x128xf32>
    %6 = vector.shape_cast %5 : vector<1x4x2x128xf32> to vector<4x2x128xf32>
    %7 = arith.negf %4 : vector<4x2x128xf32>
    %8 = math.exp %7 : vector<4x2x128xf32>
    %cst = arith.constant 1.000000e+00 : f32
    %9 = vector.broadcast %cst : f32 to vector<4x2x128xf32>
    %10 = arith.addf %9, %8 : vector<4x2x128xf32>
    %11 = arith.divf %9, %10 : vector<4x2x128xf32>
    %c0_8 = arith.constant 0 : index
    %c0_9 = arith.constant 0 : index
    %c0_10 = arith.constant 0 : index
    %12 = vector.load %arg6[%c0_8, %c0_9, %c0_10] : memref<3x4x128xf32, #tpu.memory_space<vmem>>, vector<1x4x128xf32>
    %13 = vector.shape_cast %12 : vector<1x4x128xf32> to vector<4x128xf32>
    %14 = arith.mulf %11, %6 : vector<4x2x128xf32>
    %cst_11 = arith.constant dense<0.000000e+00> : vector<4x128xf32>
    %15 = vector.multi_reduction <add>, %14, %cst_11 [1] : vector<4x2x128xf32> to vector<4x128xf32>
    %16 = arith.addf %13, %15 : vector<4x128xf32>
    %c0_12 = arith.constant 0 : index
    %c0_13 = arith.constant 0 : index
    %c0_14 = arith.constant 0 : index
    %17 = vector.load %arg6[%c0_12, %c0_13, %c0_14] : memref<3x4x128xf32, #tpu.memory_space<vmem>>, vector<1x4x128xf32>
    %18 = vector.shape_cast %17 : vector<1x4x128xf32> to vector<4x128xf32>
    %19 = vector.shape_cast %16 : vector<4x128xf32> to vector<1x4x128xf32>
    tpu.vector_store %arg6[%c0_12, %c0_13, %c0_14], %19 {strides = array<i32>} : memref<3x4x128xf32, #tpu.memory_space<vmem>>, vector<1x4x128xf32>,
    %c1 = arith.constant 1 : index
    %c0_15 = arith.constant 0 : index
    %c0_16 = arith.constant 0 : index
    %20 = vector.load %arg6[%c1, %c0_15, %c0_16] : memref<3x4x128xf32, #tpu.memory_space<vmem>>, vector<1x4x128xf32>
    %21 = vector.shape_cast %20 : vector<1x4x128xf32> to vector<4x128xf32>
    %22 = arith.mulf %11, %11 : vector<4x2x128xf32>
    %cst_17 = arith.constant dense<0.000000e+00> : vector<4x128xf32>
    %23 = vector.multi_reduction <add>, %22, %cst_17 [1] : vector<4x2x128xf32> to vector<4x128xf32>
    %24 = arith.addf %21, %23 : vector<4x128xf32>
    %c1_18 = arith.constant 1 : index
    %c0_19 = arith.constant 0 : index
    %c0_20 = arith.constant 0 : index
    %25 = vector.load %arg6[%c1_18, %c0_19, %c0_20] : memref<3x4x128xf32, #tpu.memory_space<vmem>>, vector<1x4x128xf32>
    %26 = vector.shape_cast %25 : vector<1x4x128xf32> to vector<4x128xf32>
    %27 = vector.shape_cast %24 : vector<4x128xf32> to vector<1x4x128xf32>
    tpu.vector_store %arg6[%c1_18, %c0_19, %c0_20], %27 {strides = array<i32>} : memref<3x4x128xf32, #tpu.memory_space<vmem>>, vector<1x4x128xf32>,
    %c2 = arith.constant 2 : index
    %c0_21 = arith.constant 0 : index
    %c0_22 = arith.constant 0 : index
    %28 = vector.load %arg6[%c2, %c0_21, %c0_22] : memref<3x4x128xf32, #tpu.memory_space<vmem>>, vector<1x4x128xf32>
    %29 = vector.shape_cast %28 : vector<1x4x128xf32> to vector<4x128xf32>
    %30 = arith.mulf %6, %6 : vector<4x2x128xf32>
    %cst_23 = arith.constant dense<0.000000e+00> : vector<4x128xf32>
    %31 = vector.multi_reduction <add>, %30, %cst_23 [1] : vector<4x2x128xf32> to vector<4x128xf32>
    %32 = arith.addf %29, %31 : vector<4x128xf32>
    %c2_24 = arith.constant 2 : index
    %c0_25 = arith.constant 0 : index
    %c0_26 = arith.constant 0 : index
    %33 = vector.load %arg6[%c2_24, %c0_25, %c0_26] : memref<3x4x128xf32, #tpu.memory_space<vmem>>, vector<1x4x128xf32>
    %34 = vector.shape_cast %33 : vector<1x4x128xf32> to vector<4x128xf32>
    %35 = vector.shape_cast %32 : vector<4x128xf32> to vector<1x4x128xf32>
    tpu.vector_store %arg6[%c2_24, %c0_25, %c0_26], %35 {strides = array<i32>} : memref<3x4x128xf32, #tpu.memory_space<vmem>>, vector<1x4x128xf32>,
    %c0_i32_27 = arith.constant 0 : i32
    %36 = arith.cmpi eq, %arg2, %c0_i32_27 : i32
    %37 = arith.extui %36 : i1 to i32
    %c0_i32_28 = arith.constant 0 : i32
    %38 = arith.cmpi ne, %37, %c0_i32_28 : i32
    scf.if %38 {
      %c0_29 = arith.constant 0 : index
      %c0_30 = arith.constant 0 : index
      %c0_31 = arith.constant 0 : index
      %39 = vector.load %arg6[%c0_29, %c0_30, %c0_31] : memref<3x4x128xf32, #tpu.memory_space<vmem>>, vector<3x4x128xf32>
      %c0_32 = arith.constant 0 : index
      %c0_33 = arith.constant 0 : index
      %c0_34 = arith.constant 0 : index
      %c0_35 = arith.constant 0 : index
      %c0_36 = arith.constant 0 : index
      %40 = vector.load %arg5[%c0_32, %c0_33, %c0_34, %c0_35, %c0_36] : memref<1x1x3x4x128xf32, #tpu.memory_space<vmem>>, vector<1x1x3x4x128xf32>
      %41 = vector.shape_cast %40 : vector<1x1x3x4x128xf32> to vector<3x4x128xf32>
      %42 = vector.shape_cast %39 : vector<3x4x128xf32> to vector<1x1x3x4x128xf32>
      tpu.vector_store %arg5[%c0_32, %c0_33, %c0_34, %c0_35, %c0_36], %42 {strides = array<i32>} : memref<1x1x3x4x128xf32, #tpu.memory_space<vmem>>, vector<1x1x3x4x128xf32>,
    } else {
    }
    return
  }
  func.func @transform_0(%arg0: i32, %arg1: i32, %arg2: i32) -> (i32, i32, i32, i32) {
    %c1_i32 = arith.constant 1 : i32
    %0 = arith.muli %arg1, %c1_i32 : i32
    %1 = arith.addi %0, %arg2 : i32
    %c0_i32 = arith.constant 0 : i32
    %c0_i32_0 = arith.constant 0 : i32
    %c0_i32_1 = arith.constant 0 : i32
    return %arg0, %c0_i32, %1, %c0_i32_0 : i32, i32, i32, i32
  }
  func.func @transform_1(%arg0: i32, %arg1: i32, %arg2: i32) -> (i32, i32, i32, i32) {
    %c1_i32 = arith.constant 1 : i32
    %0 = arith.muli %arg1, %c1_i32 : i32
    %1 = arith.addi %0, %arg2 : i32
    %c0_i32 = arith.constant 0 : i32
    %c0_i32_0 = arith.constant 0 : i32
    %c0_i32_1 = arith.constant 0 : i32
    return %arg0, %c0_i32, %1, %c0_i32_0 : i32, i32, i32, i32
  }
  func.func @transform_2(%arg0: i32, %arg1: i32, %arg2: i32) -> (i32, i32, i32, i32, i32) {
    %c0_i32 = arith.constant 0 : i32
    %c0_i32_0 = arith.constant 0 : i32
    %c0_i32_1 = arith.constant 0 : i32
    %c0_i32_2 = arith.constant 0 : i32
    return %arg0, %arg1, %c0_i32, %c0_i32_0, %c0_i32_1 : i32, i32, i32, i32, i32
  }
}

</mosaic_0001>

<bundles_post_ra>
// kernel: tpu_custom_call.1
= control target key start
LH: loop header
LB: loop body
LE: loop exit
PB: predicated region body
PF: predicated region fallthrough
CT: control target
= control target key end

     0   :  { %7 = vsyncpa [#allocation4], 0  ;;  %s1149_s0 = inlined_call_operand.hbm [shape: f32[2,4,2,128], index: 0, kind: input, shape index: {}]   ;;  %s1150_s1 = inlined_call_operand.hbm [shape: f32[2,5,2,128], index: 1, kind: input, shape index: {}]   ;;  %s1151_s2 = inlined_call_operand.hbm [shape: f32[2,1,3,4,128], index: 2, kind: output, shape index: {}]  }
   0x1   :  { %9 = vsyncpa [#allocation4 + $0x1], 0 }
   0x2   :  { %10 = vsyncpa [#allocation7], 0 }
   0x3   :  { %12 = vsyncpa [#allocation7 + $0x1], 0 }
   0x4   :  { %13 = vsyncpa [#allocation5], 0 }
   0x5   :  { %15 = vsyncpa [#allocation5 + $0x1], 0  ;;  %s889_s9 = smov 0   ;;  %s891_s10 = smov 0  }
   0x6   :  { %s893_s11 = smov 0   ;;  %s895_s12 = smov 0  }
   0x7   :  { %s897_s13 = smov 0   ;;  %s899_s14 = smov 0  }
   0x8 LB: > { %s610_s15 = sadd.s32 4294967295, %s867_s14   ;;  %s611_s16 = sadd.s32 4294967294, %s867_s14   ;;  %s867_s14 = sphi %s899_s14, %s21_s14   ;;  %s863_s13 = sphi %s897_s13, %s1177_s13   ;;  %s859_s12 = sphi %s895_s12, %s1176_s12   ;;  %s855_s11 = sphi %s893_s11, %s1175_s11   ;;  %s851_s10 = sphi %s891_s10, %s1174_s10   ;;  %s847_s9 = sphi %s889_s9, %s1173_s9  }
   0x9   : > { %s40_s17 = sadd.s32 1, %s863_s13  ;;  %s51_s18 = sadd.s32 1, %s855_s11 }
   0xa   : > { %p42_p0 = scmp.ge.s32.totalorder %s40_s17, 2  ;;  %p58_p1 = scmp.ne.s32.totalorder %s855_s11, %s851_s10 }
   0xb   : > { %p59_p2 = scmp.eq.s32.totalorder %s867_s14, 0  ;;  %p64_p3 = scmp.ne.s32.totalorder %s851_s10, %s847_s9 }
   0xc   : > { %s1179_s17 = smov (%p42_p0, %s40_s17), 0  ;;  %p65_p5 = scmp.eq.s32.totalorder %s610_s15, 0 }
   0xd   : > { %p930_p4 = por %p59_p2, %p58_p1  ;;  %s46_s20 = ssub.s32 %s863_s13, %s1179_s17 }
   0xe   : > { %p120_p6 = scmp.eq.s32.totalorder %s610_s15, 1  ;;  %p49_p7 = scmp.eq.s32.totalorder %s46_s20, 0 }
   0xf   : > { %p936_p8 = por %p65_p5, %p64_p3  ;;  %p126_p10 = scmp.eq.s32.totalorder %s611_s16, 1 }
  0x10   : > { %p940_p9 = por %p120_p6, %p58_p1  ;;  %p613_p12 = scmp.ge.s32.totalorder %s867_s14, 2 }
  0x11   : > { %s945_s23 = scalar_select %p49_p7, %s855_s11, %s51_s18  }
  0x12   : > { %p947_p11 = por %p126_p10, %p64_p3  ;;  %p650_p13 = scmp.lt.s32.totalorder %s867_s14, 2 }
  0x13   : > { %s954_s25 = sand.u32 1, %s855_s11   ;;  %s629_s27 = sshll.u32 %s863_s13, 3 }
  0x14   : > { %s614_s26 = sshll.u32 %s954_s25, 3  ;;  %s157_s30 = scalar_lea.hbm %s1149_s0, %s629_s27 }
  0x15   : > { %s150_s3 = scalar_lea.vmem [#allocation3], %s614_s26  ;;  %s158_s5 = sshll.u32 %s157_s30, 4  ;;  %s159_s5 = int_to_ptr.hbm [resolvable:$true] %s158_s5 }
  0x16   : > { %s160_s4 = sshll.u32 %s150_s3, 4  ;;  %p963_p0 = pnand %p650_p13, %p930_p4  ;;  %s161_s4 = int_to_ptr.vmem [resolvable:$true] %s160_s4 }
  0x17   : > { %p619_p1 = scmp.ge.s32.totalorder %s867_s14, 1  ;;  %s147_s7 = scalar_lea.sflag [#allocation4], %s954_s25 }
  0x18   : > { %s869_s8 = smov 32   ;;  %s870_s15 = smov 2  }
  0x19   : > { %642 = dma.hbm_to_vmem [thread:$0]  (!%p963_p0), %s159_s5, 128, %s161_s4, %s147_s7, %s869_s8, %s869_s8, %s870_s15  }
  0x1a   : > { %p192_p2 = scmp.lt.s32.totalorder %s867_s14, 3  ;;  %s630_s16 = smul.u32 10, %s863_s13 }
  0x1b   : > { %s174_s18 = scalar_lea.vmem [#allocation6], %s614_s26  ;;  %s171_s30 = scalar_lea.sflag [#allocation7], %s954_s25 }
  0x1c   : > { %p193_p3 = pnand %p619_p1, %p192_p2  ;;  %s184_s20 = sshll.u32 %s174_s18, 4  ;;  %s185_s20 = int_to_ptr.vmem [resolvable:$true] %s184_s20 }
  0x1d   : > { %s181_s28 = scalar_lea.hbm %s1150_s1, %s630_s16  ;;  %s980_s3 = sand.u32 (!%p193_p3), 1, %s851_s10  }
  0x1e   : > { %s182_s29 = sshll.u32 %s181_s28, 4  ;;  %196 = sbr.rel (%p193_p3) target bundleno = 107 (0x6b), region = 28  ;;  %s183_s29 = int_to_ptr.hbm [resolvable:$true] %s182_s29 }
  0x1f   : > { %645 = dma.hbm_to_vmem [thread:$0]  (!%p963_p0), %s183_s29, 128, %s185_s20, %s171_s30, %s869_s8, %s869_s8, %s870_s15  }
  0x20   : > { %s620_s4 = sshll.u32 (!%p193_p3), %s980_s3, 3  ;;  %s199_s26 = scalar_lea.sflag (!%p193_p3), [#allocation4], %s980_s3 }
  0x21   : > { %s202_s5 = scalar_lea.vmem (!%p193_p3), [#allocation3], %s620_s4 }
  0x23   : > { %834 = dma.done.wait (%p936_p8), %s199_s26, 128  }
  0x24   : > { %836 = vsyncadd (%p936_p8), %s199_s26, 4294967168  ;;  %s209_s25 = scalar_lea.sflag [#allocation7], %s980_s3  ;;  %s212_s6 = scalar_lea.vmem [#allocation6], %s620_s4 }
  0x25   : > { %838 = dma.done.wait (%p936_p8), %s209_s25, 128  }
  0x26   : > { %840 = vsyncadd (%p936_p8), %s209_s25, 4294967168  ;;  %v871_v0 = vmov 0.0   ;;  %v248_v1 = vld [vmem:[%s202_s5] sm:$0x3]  ;;  %v249_v2 = vld [vmem:[%s202_s5 + $0x2] sm:$0x3] }
  0x27   : > { %245 = vst [vmem:[#allocation2] sm:$0xf] %v871_v0  ;;  %v250_v3 = vld [vmem:[%s202_s5 + $0x4] sm:$0x3]  ;;  %v251_v4 = vld [vmem:[%s202_s5 + $0x6] sm:$0x3] }
  0x28   : > { %246 = vst [vmem:[#allocation2 + $0x4] sm:$0xf] %v871_v0  ;;  %v993_v5 = vld [vmem:[%s212_s6] sm:$0x3]  ;;  %v995_v6 = vld [vmem:[%s212_s6 + $0x2] sm:$0x3] }
  0x29   : > { %247 = vst [vmem:[#allocation2 + $0x8] sm:$0xf] %v871_v0  ;;  %v997_v7 = vld [vmem:[%s212_s6 + $0x4] sm:$0x3]  ;;  %v999_v8 = vld [vmem:[%s212_s6 + $0x6] sm:$0x3]  ;;  %v425_v13 = vmul.f32 %v993_v5, %v993_v5  ;;  %v426_v14 = vmul.f32 %v995_v6, %v995_v6 }
  0x2a   : > { %v622_v9 = vmul.f32 -1.442695, %v248_v1  ;;  %v623_v10 = vmul.f32 -1.442695, %v249_v2  ;;  %v624_v11 = vmul.f32 -1.442695, %v250_v3  ;;  %v427_v15 = vmul.f32 %v997_v7, %v997_v7 }
  0x2b   : > { %v625_v12 = vmul.f32 -1.442695, %v251_v4  ;;  %vm337_vm0 = vcmask 1041408   ;;  %v428_v16 = vmul.f32 %v999_v8, %v999_v8  ;;  %vm370_vm8 = vcmask 1041409   ;;  %s631_s21 = smul.u32 12, %s980_s3  ;;  %s801_s4 = scalar_lea.hbm %s1151_s2, 24 }
  0x2c   : > { %705 = vpow2.f32 %v622_v9  ;;  %v429_v17 = vsel %vm337_vm0, %v425_v13, 0.0  ;;  %v436_v19 = vsel %vm337_vm0, %v426_v14, 0.0  ;;  %v443_v20 = vsel %vm337_vm0, %v427_v15, 0.0  ;;  %s632_s7 = smul.u32 12, %s859_s12  ;;  %s477_s12 = scalar_lea.sflag [#allocation5], %s980_s3 }
  0x2d   : > { %707 = vpow2.f32 %v623_v10  ;;  %v430_v18 = vrot.slane %v429_v17, 4  ;;  %v450_v21 = vsel %vm337_vm0, %v428_v16, 0.0  ;;  %v437_v23 = vrot.slane %v436_v19, 4  ;;  %s238_s18 = scalar_lea.vmem [#allocation8], %s631_s21 }
  0x2e   : > { %709 = vpow2.f32 %v624_v11  ;;  %v444_v24 = vrot.slane %v443_v20, 4  ;;  %v451_v25 = vrot.slane %v450_v21, 4  ;;  %vm372_vm10 = vcmask 1042434   ;;  %s490_s16 = scalar_lea.hbm %s1151_s2, %s632_s7  ;;  %s491_s20 = sshll.u32 %s238_s18, 4  ;;  %s492_s20 = int_to_ptr.vmem [resolvable:$true] %s491_s20 }
  0x2f   : > { %711 = vpow2.f32 %v625_v12  ;;  %v431_v22 = vadd.f32 %v430_v18, %v429_v17  ;;  %v438_v32 = vadd.f32 %v437_v23, %v436_v19  ;;  %s493_s27 = sshll.u32 %s490_s16, 4  ;;  %s494_s27 = int_to_ptr.hbm [resolvable:$true] %s493_s27 }
  0x30   : > { %v445_v35 = vadd.f32 %v444_v24, %v443_v20  ;;  %v452_v36 = vadd.f32 %v451_v25, %v450_v21  ;;  %s795_s19 = sshra.s32 %s494_s27, 4  ;;  %s796_s19 = int_to_ptr.hbm [resolvable:$true] %s795_s19 }
  0x31   : > { %v432_v29 = vrot.slane %v431_v22, 2  ;;  %v439_v45 = vrot.slane %v438_v32, 2  ;;  %s797_s28 = scalar_lea.hbm %s796_s19, 12  ;;  %p802_p7 = scmp.lt.s32.totalorder %s796_s19, %s1151_s2 }
  0x32   : > { %v706_v26 = vpop.eup %705  ;;  %v446_v46 = vrot.slane %v445_v35, 2  ;;  %v453_v47 = vrot.slane %v452_v36, 2  ;;  %p798_p4 = scmp.ne.s32.totalorder %s796_s19, %s797_s28  ;;  %p803_p8 = scmp.lt.s32.totalorder %s801_s4, %s797_s28 }
  0x33   : > { %v708_v27 = vpop.eup %707  ;;  %v268_v28 = vadd.f32 1.0, %v706_v26  ;;  %v433_v42 = vadd.f32 %v432_v29, %v431_v22  ;;  %v440_v62 = vadd.f32 %v439_v45, %v438_v32 }
  0x34   : > { %v710_v30 = vpop.eup %709  ;;  %v269_v31 = vadd.f32 1.0, %v708_v27  ;;  %v447_v1 = vadd.f32 %v446_v46, %v445_v35  ;;  %v454_v10 = vadd.f32 %v453_v47, %v452_v36  ;;  %p799_p5 = pnand %p798_p4, %p940_p9  ;;  %p804_p10 = por %p803_p8, %p802_p7 }
  0x35   : > { %v712_v33 = vpop.eup %711  ;;  %v1013_v34 = vadd.f32 1.0, %v710_v30  ;;  %713 = vrcp.f32 %v268_v28  ;;  %v281_v38 = vand.u32 2147483647, %v268_v28  ;;  %v283_v39 = vand.u32 2147483648, %v268_v28 }
  0x36   : > { %v1015_v37 = vadd.f32 1.0, %v712_v33  ;;  %715 = vrcp.f32 %v269_v31  ;;  %v296_v40 = vand.u32 2147483647, %v269_v31  ;;  %v298_v41 = vand.u32 2147483648, %v269_v31  ;;  %p800_p6 = pneg %p799_p5 }
  0x37   : > { %717 = vrcp.f32 %v1013_v34  ;;  %v311_v43 = vand.u32 2147483647, %v1013_v34  ;;  %v313_v44 = vand.u32 2147483648, %v1013_v34  ;;  %vm277_vm1 = vweird.f32 %v268_v28 }
  0x38   : > { %719 = vrcp.f32 %v1015_v37  ;;  %vm1021_vm2 = vcmp.eq.f32.partialorder %v281_v38, 8.507059e+37  ;;  %v284_v49 = vor.u32 1.1754944e-38, %v283_v39  ;;  %vm292_vm3 = vweird.f32 %v269_v31  ;;  %p805_p13 = pnand %p804_p10, %p800_p6 }
  0x39   : > { %vm307_vm4 = vweird.f32 %v1013_v34  ;;  %vm1026_vm5 = vcmp.eq.f32.partialorder %v296_v40, 8.507059e+37  ;;  %v299_v52 = vor.u32 1.1754944e-38, %v298_v41  ;;  %v314_v53 = vor.u32 1.1754944e-38, %v313_v44 }
  0x3a   : > { %vm322_vm6 = vweird.f32 %v1015_v37  ;;  %v434_v54 = vrot.slane %v433_v42, 1  ;;  %vm1031_vm7 = vcmp.eq.f32.partialorder %v311_v43, 8.507059e+37  ;;  %v326_v58 = vand.u32 2147483647, %v1015_v37 }
  0x3b   : > { %v714_v50 = vpop.eup %713  ;;  %v328_v59 = vand.u32 2147483648, %v1015_v37  ;;  %v441_v9 = vrot.slane %v440_v62, 1  ;;  %v448_v17 = vrot.slane %v447_v1, 1  ;;  %v455_v18 = vrot.slane %v454_v10, 1 }
  0x3c   : > { %v716_v55 = vpop.eup %715  ;;  %v273_v56 = vmul.f32 %v714_v50, %v268_v28  ;;  %vm278_vm9 = vweird.f32 %v714_v50  ;;  %v435_v4 = vadd.f32 %v434_v54, %v433_v42 }
  0x3d   : > { %v718_v60 = vpop.eup %717  ;;  %v288_v61 = vmul.f32 %v716_v55, %v269_v31  ;;  %vm293_vm11 = vweird.f32 %v716_v55  ;;  %vm1041_vm13 = vmor %vm277_vm1, %vm278_vm9  ;;  %v442_v16 = vadd.f32 %v441_v9, %v440_v62  ;;  %vm1057_vm9 = vcmp.eq.f32.partialorder %v326_v58, 8.507059e+37 }
  0x3e   : > { %v274_v63 = vsub.f32 1.0, %v273_v56  ;;  %v303_v0 = vmul.f32 %v718_v60, %v1013_v34  ;;  %v720_v2 = vpop.eup %719  ;;  %vm308_vm12 = vweird.f32 %v718_v60  ;;  %vm1047_vm14 = vmor %vm292_vm3, %vm293_vm11  ;;  %v449_v26 = vadd.f32 %v448_v17, %v447_v1 }
  0x3f   : > { %v289_v3 = vsub.f32 1.0, %v288_v61  ;;  %v318_v13 = vmul.f32 %v720_v2, %v1015_v37  ;;  %vm323_vm15 = vweird.f32 %v720_v2  ;;  %vm1053_vm1 = vmor %vm307_vm4, %vm308_vm12  ;;  %v461_v27 = vsel %vm370_vm8, %v442_v16, %v435_v4 }
  0x40   : > { %v275_v11 = vmul.f32 %v714_v50, %v274_v63  ;;  %v304_v12 = vsub.f32 1.0, %v303_v0  ;;  %v329_v31 = vor.u32 1.1754944e-38, %v328_v59  ;;  %vm1070_vm3 = vmor %vm322_vm6, %vm323_vm15  ;;  %v1074_v35 = vadd.f32 %v455_v18, %v454_v10 }
  0x41   : > { %v290_v15 = vmul.f32 %v716_v55, %v289_v3  ;;  %v319_v22 = vsub.f32 1.0, %v318_v13  ;;  %v1077_v36 = vsel %vm372_vm10, %v449_v26, %v461_v27 }
  0x42   : > { %v276_v19 = vadd.f32 %v714_v50, %v275_v11  ;;  %v305_v21 = vmul.f32 %v718_v60, %v304_v12 }
  0x43   : > { %v291_v23 = vadd.f32 %v716_v55, %v290_v15  ;;  %v320_v30 = vmul.f32 %v720_v2, %v319_v22 }
  0x44   : > { %v280_v28 = vsel %vm1041_vm13, %v714_v50, %v276_v19  ;;  %v306_v29 = vadd.f32 %v718_v60, %v305_v21 }
  0x45   : > { %v285_v32 = vsel %vm1021_vm2, %v284_v49, %v280_v28  ;;  %v295_v33 = vsel %vm1047_vm14, %v716_v55, %v291_v23  ;;  %v321_v40 = vadd.f32 %v720_v2, %v320_v30  ;;  %vm374_vm2 = vcmask 1043459  }
  0x46   : > { %v300_v38 = vsel %vm1026_vm5, %v299_v52, %v295_v33  ;;  %v310_v39 = vsel %vm1053_vm1, %v718_v60, %v306_v29  ;;  %v333_v41 = vmul.f32 %v285_v32, %v993_v5  ;;  %v381_v43 = vmul.f32 %v285_v32, %v285_v32  ;;  %v424_v33 = vld [vmem:[#allocation2 + $0x8] sm:$0xf] }
  0x47   : > { %v315_v37 = vsel %vm1031_vm7, %v314_v53, %v310_v39  ;;  %v334_v42 = vmul.f32 %v300_v38, %v995_v6  ;;  %v382_v44 = vmul.f32 %v300_v38, %v300_v38  ;;  %v325_v45 = vsel %vm1070_vm3, %v720_v2, %v321_v40 }
  0x48   : > { %v335_v46 = vmul.f32 %v315_v37, %v997_v7  ;;  %v338_v47 = vsel %vm337_vm0, %v333_v41, 0.0  ;;  %v383_v48 = vmul.f32 %v315_v37, %v315_v37  ;;  %v330_v49 = vsel %vm1057_vm9, %v329_v31, %v325_v45 }
  0x49   : > { %v339_v50 = vrot.slane %v338_v47, 4  ;;  %v345_v5 = vsel %vm337_vm0, %v334_v42, 0.0  ;;  %v385_v51 = vsel %vm337_vm0, %v381_v43, 0.0  ;;  %v336_v6 = vmul.f32 %v330_v49, %v999_v8 }
  0x4a   : > { %v346_v52 = vrot.slane %v345_v5, 4  ;;  %v352_v53 = vsel %vm337_vm0, %v335_v46, 0.0  ;;  %v384_v54 = vmul.f32 %v330_v49, %v330_v49  ;;  %v386_v56 = vrot.slane %v385_v51, 4 }
  0x4b   : > { %v340_v55 = vadd.f32 %v339_v50, %v338_v47  ;;  %v353_v7 = vrot.slane %v352_v53, 4  ;;  %v392_v57 = vsel %vm337_vm0, %v382_v44, 0.0  ;;  %v359_v59 = vsel %vm337_vm0, %v336_v6, 0.0  ;;  %v332_v44 = vld [vmem:[#allocation2] sm:$0xf] }
  0x4c   : > { %v347_v58 = vadd.f32 %v346_v52, %v345_v5  ;;  %v393_v60 = vrot.slane %v392_v57, 4  ;;  %v399_v61 = vsel %vm337_vm0, %v383_v48, 0.0  ;;  %v360_v0 = vrot.slane %v359_v59, 4 }
  0x4d   : > { %v341_v62 = vrot.slane %v340_v55, 2  ;;  %v354_v63 = vadd.f32 %v353_v7, %v352_v53  ;;  %v387_v8 = vadd.f32 %v386_v56, %v385_v51  ;;  %v400_v3 = vrot.slane %v399_v61, 4 }
  0x4e   : > { %v348_v1 = vrot.slane %v347_v58, 2  ;;  %v394_v2 = vadd.f32 %v393_v60, %v392_v57  ;;  %v406_v4 = vsel %vm337_vm0, %v384_v54, 0.0  ;;  %v361_v11 = vadd.f32 %v360_v0, %v359_v59 }
  0x4f   : > { %v342_v9 = vadd.f32 %v341_v62, %v340_v55  ;;  %v355_v10 = vrot.slane %v354_v63, 2  ;;  %v388_v12 = vrot.slane %v387_v8, 2  ;;  %v401_v15 = vadd.f32 %v400_v3, %v399_v61 }
  0x50   : > { %v349_v13 = vadd.f32 %v348_v1, %v347_v58  ;;  %v395_v14 = vrot.slane %v394_v2, 2  ;;  %v407_v16 = vrot.slane %v406_v4, 4  ;;  %v362_v19 = vrot.slane %v361_v11, 2 }
  0x51   : > { %v343_v17 = vrot.slane %v342_v9, 1  ;;  %v356_v18 = vadd.f32 %v355_v10, %v354_v63  ;;  %v389_v20 = vadd.f32 %v388_v12, %v387_v8  ;;  %v402_v23 = vrot.slane %v401_v15, 2 }
  0x52   : > { %v350_v21 = vrot.slane %v349_v13, 1  ;;  %v396_v22 = vadd.f32 %v395_v14, %v394_v2  ;;  %v408_v24 = vadd.f32 %v407_v16, %v406_v4  ;;  %v363_v27 = vadd.f32 %v362_v19, %v361_v11 }
  0x53   : > { %v344_v25 = vadd.f32 %v343_v17, %v342_v9  ;;  %v357_v26 = vrot.slane %v356_v18, 1  ;;  %v390_v28 = vrot.slane %v389_v20, 1  ;;  %v403_v31 = vadd.f32 %v402_v23, %v401_v15 }
  0x54   : > { %v351_v29 = vadd.f32 %v350_v21, %v349_v13  ;;  %v397_v30 = vrot.slane %v396_v22, 1  ;;  %v409_v32 = vrot.slane %v408_v24, 2  ;;  %v364_v38 = vrot.slane %v363_v27, 1 }
  0x55   : > { %v358_v34 = vadd.f32 %v357_v26, %v356_v18  ;;  %v391_v39 = vadd.f32 %v390_v28, %v389_v20  ;;  %v463_v40 = vsel %vm374_vm2, %v1074_v35, %v1077_v36  ;;  %v404_v42 = vrot.slane %v403_v31, 1  ;;  %v380_v36 = vld [vmem:[#allocation2 + $0x4] sm:$0xf] }
  0x56   : > { %v371_v41 = vsel %vm370_vm8, %v351_v29, %v344_v25  ;;  %v398_v37 = vadd.f32 %v397_v30, %v396_v22  ;;  %v410_v43 = vadd.f32 %v409_v32, %v408_v24  ;;  %v365_v45 = vadd.f32 %v364_v38, %v363_v27 }
  0x57   : > { %v373_v46 = vsel %vm372_vm10, %v358_v34, %v371_v41  ;;  %v465_v47 = vadd.f32 %v463_v40, %v424_v33  ;;  %v405_v48 = vadd.f32 %v404_v42, %v403_v31 }
  0x58   : > { %v411_v49 = vrot.slane %v410_v43, 1  ;;  %v417_v50 = vsel %vm370_vm8, %v398_v37, %v391_v39  ;;  %v375_v5 = vsel %vm374_vm2, %v365_v45, %v373_v46 }
  0x59   : > { %466 = vst [vmem:[#allocation2 + $0x8] sm:$0xf] %v465_v47  ;;  %v377_v35 = vadd.f32 %v375_v5, %v332_v44  ;;  %v418_v6 = vsel %vm372_vm10, %v405_v48, %v417_v50 }
  0x5a   : > { %v412_v51 = vadd.f32 %v411_v49, %v410_v43 }
  0x5b   : > { %378 = vst [vmem:[#allocation2] sm:$0xf] %v377_v35 }
  0x5c   : > { %v419_v52 = vsel %vm374_vm2, %v412_v51, %v418_v6 }
  0x5d   : > { %v421_v53 = vadd.f32 %v419_v52, %v380_v36 }
  0x5f   : > { %422 = vst [vmem:[#allocation2 + $0x4] sm:$0xf] %v421_v53 }
  0x60   : > { %v472_v54 = vld [vmem:[#allocation2 + $0x8] sm:$0xf] }
  0x61   : > { %475 = vst [vmem:[%s238_s18 + $0x8] sm:$0xf] %v472_v54 }
  0x66   : > { %v470_v55 = vld [vmem:[#allocation2] sm:$0xff]  }
  0x67   : > { %473 = vst [vmem:[%s238_s18] sm:$0xff] %v470_v55  }
  0x68   : > { %808 = shalt.err (!%p805_p13)
}
  0x69   : > { %s872_s3 = smov 64   ;;  %s873_s25 = smov 4  }
  0x6a   : > { %637 = dma.vmem_to_hbm [thread:$0]  (%p940_p9), %s492_s20, 192, %s494_s27, %s477_s12, %s872_s3, %s872_s3, %s873_s25  }
  0x6b PF: > { %s508_s6 = sand.u32 1, %s847_s9   ;;  %p647_p0 = pnand %p613_p12, %p947_p11 }
  0x6c   : > { %s509_s21 = scalar_lea.sflag [#allocation5], %s508_s6 }
  0x6d   : > { %p648_p1 = pneg %p647_p0 }
  0x6f   : > { %842 = dma.done.wait (%p648_p1), %s509_s21, 192  }
  0x70   : > { %844 = vsyncadd (%p648_p1), %s509_s21, 4294967104  ;;  %s21_s14 = sadd.s32 1, %s867_s14   ;;  %s1173_s9 = smov %s851_s10 }
  0x71   : > { %p18_p2 = scmp.ge.s32.totalorder %s21_s14, 4   ;;  %s1174_s10 = smov %s855_s11 }
  0x72   : > { %s1175_s11 = smov %s945_s23  ;;  %s1176_s12 = smov %s863_s13 }
  0x73   : > { %s1177_s13 = smov %s1179_s17  ;;  %20 = sbr.rel (!%p18_p2) target bundleno = 8 (0x8), region = 96 }
  0x78   :  { %515 = vsyncpa [#allocation4], 1 }
  0x79   :  { %517 = vsyncpa [#allocation4 + $0x1], 1 }
  0x7a   :  { %518 = vsyncpa [#allocation7], 1 }
  0x7b   :  { %520 = vsyncpa [#allocation7 + $0x1], 1 }
  0x7c   :  { %521 = vsyncpa [#allocation5], 1 }
  0x7d   :  { %523 = vsyncpa [#allocation5 + $0x1], 1 }

</bundles_post_ra>
